<compile_context>
chip_gen: v7x
topology: tpu7x:2x2x1
jax: 0.10.0
libtpu: 0.0.40
codegen_flags: <defaults>
</compile_context>

<pallas_src>
import functools
import math

import jax
import jax.numpy as jnp
from jax.experimental import pallas as pl
from jax.experimental.pallas import tpu as pltpu

_LANE = 128
_SUBLANE = 8
_WIDE_LANES = 8 * _LANE            # 1024-wide slab for large tensors
_WIDE_THRESHOLD = 128 * 1024       # elements; below this use 128 lanes


def _cdiv(a, b):
    return -(-a // b)


def _round_up(x, m):
    return _cdiv(x, m) * m


@functools.lru_cache(maxsize=None)
def _chip_params():
    """Per-generation (target_block_elems, vmem_limit_bytes).

    v5e/v6e (128 MiB physical VMEM): 8 MiB f32 blocks per input, 96 MiB limit.
    v7x (64 MiB VMEM/TC) or unknown backend: 4 MiB blocks, 48 MiB limit
    ('none' path worst case: 3 arrays x 2 bufs x 4 MiB = 24 MiB + temporaries,
    comfortably inside 48 MiB, which itself fits every generation).
    """
    vmem_cap = 0
    try:
        vmem_cap = int(getattr(pltpu.get_tpu_info(), "vmem_capacity_bytes", 0))
    except Exception:
        vmem_cap = 0
    if vmem_cap >= 128 * 1024 * 1024:
        return 2 * 1024 * 1024, 96 * 1024 * 1024
    return 1 * 1024 * 1024, 48 * 1024 * 1024


def _plan(n, target_block_elems):
    """Choose (lanes, rows, block_rows, nblocks, n_seg) for n flat elements.

    lanes in {128, 1024}; block_rows % 8 == 0.  rows (= cdiv(n, lanes)) may be
    ragged w.r.t. block_rows and 8 -- the kernels handle the partial trailing
    block -- so no padding of the row dimension is ever needed.
    """
    if n % _LANE == 0:
        if n % _WIDE_LANES == 0 and n >= _WIDE_THRESHOLD:
            lanes = _WIDE_LANES
        else:
            lanes = _LANE
    else:
        lanes = _LANE                       # pad fallback; keep waste minimal
    rows = _cdiv(max(n, 1), lanes)
    target_rows = max(_SUBLANE,
                      (target_block_elems // lanes) // _SUBLANE * _SUBLANE)
    block_rows = min(target_rows, _round_up(rows, _SUBLANE))
    nblocks = _cdiv(rows, block_rows)
    n_seg = 2 if nblocks >= 2 else 1        # feeds both TCs on v7x; harmless on 1-TC
    return lanes, rows, block_rows, nblocks, n_seg


def _to_slab(x, rows, lanes):
    """Flatten to (rows, lanes).  Pads ONLY when n % lanes != 0 (rare path);
    otherwise this is a pure bitcast reshape (no extra HBM pass)."""
    flat = jnp.reshape(x, (-1,))
    total = rows * lanes
    if flat.shape[0] != total:
        flat = jnp.pad(flat, (0, total - flat.shape[0]))
    return jnp.reshape(flat, (rows, lanes))


def _mse_none_kernel(w_ref, x1_ref, x2_ref, out_ref):
    """Elementwise weighted squared difference (lane-dense, full-width blocks).

    loss_weight arrives as a (1,) f32 SMEM scalar (no recompile per weight).
    The last grid block may hang past the end of the slab; its out-of-bounds
    rows are never written back, so no masking is needed here.
    """
    d = x1_ref[...].astype(jnp.float32) - x2_ref[...].astype(jnp.float32)
    out_ref[...] = (w_ref[0] * (d * d)).astype(out_ref.dtype)


def _mse_reduce_kernel(x1_ref, x2_ref, out_ref, acc_ref, *,
                       rows, block_rows, steps_per_seg, lanes):
    """Per-segment partial sums into a resident (8, lanes) f32 VMEM scratch.

    Steady state is vld + VPU adds only.  Ragged / duplicated trailing blocks
    are masked with a row-index iota (their OOB rows contain garbage, not
    zeros).  The cross-lane fold to an (8, 128) row happens once per segment,
    on the last grid step, so only a tiny per-segment output hits HBM.
    """
    s = pl.program_id(0)
    i = pl.program_id(1)
    t = s * steps_per_seg + i               # flat (unclamped) block index
    row0 = t * block_rows

    @pl.when(i == 0)
    def _():
        acc_ref[...] = jnp.zeros_like(acc_ref)

    d = x1_ref[...].astype(jnp.float32) - x2_ref[...].astype(jnp.float32)
    sq = d * d

    def _vreg_rowsum(v):
        # (block_rows, lanes) -> (block_rows//8, 8, lanes); summing the leading
        # (non-lane, non-sublane) axis is pure vreg-wise VPU addition.
        return jnp.sum(v.reshape(-1, _SUBLANE, v.shape[-1]), axis=0)

    is_full = row0 + block_rows <= rows

    @pl.when(is_full)
    def _():
        acc_ref[...] += _vreg_rowsum(sq)

    @pl.when(jnp.logical_not(is_full))
    def _():
        # Partial (or duplicated, clamped) trailing block: mask garbage rows.
        ridx = row0 + jax.lax.broadcasted_iota(jnp.int32, sq.shape, 0)
        acc_ref[...] += _vreg_rowsum(jnp.where(ridx < rows, sq, 0.0))

    @pl.when(i == pl.num_programs(1) - 1)
    def _():
        acc = acc_ref[...]
        r = acc[:, :_LANE]
        for j in range(1, lanes // _LANE):   # static; at most 7 (8,128) adds
            r = r + acc[:, j * _LANE:(j + 1) * _LANE]
        out_ref[0] = r


def mse_loss_pallas(x1, x2, reduction="mean", loss_weight=1.0,
                    reduction_override=None, _target_block_elems=None):
    assert reduction_override in (None, "none", "mean", "sum")
    reduction = reduction_override if reduction_override else reduction
    assert reduction in ("none", "mean", "sum")
    assert x1.shape == x2.shape
    orig_shape = x1.shape
    orig_dtype = x1.dtype
    n = int(math.prod(orig_shape)) if orig_shape else 1

    # Empty-tensor semantics match PyTorch: 'none'->empty, 'sum'->0, 'mean'->NaN.
    if n == 0:
        if reduction == "none":
            return jnp.zeros(orig_shape, orig_dtype)
        val = 0.0 if reduction == "sum" else float("nan")
        return jnp.asarray(val, dtype=orig_dtype)

    target_default, vmem_limit = _chip_params()
    target = _target_block_elems or target_default
    lanes, rows, block_rows, nblocks, n_seg = _plan(n, target)

    x1p = _to_slab(x1, rows, lanes)
    x2p = _to_slab(x2, rows, lanes)

    if reduction == "none":
        w = jnp.full((1,), loss_weight, dtype=jnp.float32)
        out = pl.pallas_call(
            _mse_none_kernel,
            out_shape=jax.ShapeDtypeStruct((rows, lanes), orig_dtype),
            grid_spec=pltpu.PrefetchScalarGridSpec(
                num_scalar_prefetch=0,
                grid=(nblocks,),
                in_specs=[
                    pl.BlockSpec(memory_space=pltpu.MemorySpace.SMEM),  # weight
                    pl.BlockSpec((block_rows, lanes), lambda i: (i, 0)),
                    pl.BlockSpec((block_rows, lanes), lambda i: (i, 0)),
                ],
                out_specs=pl.BlockSpec((block_rows, lanes), lambda i: (i, 0)),
            ),
            compiler_params=pltpu.CompilerParams(
                dimension_semantics=("parallel",),
                vmem_limit_bytes=vmem_limit),
        )(w, x1p, x2p)
        flat = jnp.reshape(out, (-1,))
        if flat.shape[0] != n:          # only on the padded (n % 128 != 0) fallback
            flat = flat[:n]
        return jnp.reshape(flat, orig_shape)

    # 'sum' / 'mean': per-segment (8, 128) partials, finished (scale) in JAX.
    steps_per_seg = _cdiv(nblocks, n_seg)
    # Clamp the block index so the (at most one) overhanging step of the last
    # segment re-reads a valid block; its contribution is masked to zero.
    idx_map = lambda s, i: (jnp.minimum(s * steps_per_seg + i, nblocks - 1), 0)
    partials = pl.pallas_call(
        functools.partial(_mse_reduce_kernel, rows=rows, block_rows=block_rows,
                          steps_per_seg=steps_per_seg, lanes=lanes),
        out_shape=jax.ShapeDtypeStruct((n_seg, _SUBLANE, _LANE), jnp.float32),
        grid_spec=pltpu.PrefetchScalarGridSpec(
            num_scalar_prefetch=0,
            grid=(n_seg, steps_per_seg),
            in_specs=[
                pl.BlockSpec((block_rows, lanes), idx_map),
                pl.BlockSpec((block_rows, lanes), idx_map),
            ],
            out_specs=pl.BlockSpec((1, _SUBLANE, _LANE), lambda s, i: (s, 0, 0)),
            scratch_shapes=[pltpu.VMEM((_SUBLANE, lanes), jnp.float32)],
        ),
        compiler_params=pltpu.CompilerParams(
            dimension_semantics=("parallel", "arbitrary"),
            vmem_limit_bytes=vmem_limit),
    )(x1p, x2p)

    scale = float(loss_weight)
    if reduction == "mean":
        scale = scale / float(n)
    loss = scale * jnp.sum(partials, dtype=jnp.float32)
    # Match PyTorch dtype semantics (reduced loss in the input dtype).
    return loss.astype(orig_dtype)


class MSELossPallas:
    """Mirror of the PyTorch MSELoss module (no learnable parameters)."""

    def __init__(self, reduction="mean", loss_weight=1.0):
        self.reduction = reduction
        self.loss_weight = loss_weight

    def __call__(self, x1, x2, reduction_override=None):
        return mse_loss_pallas(x1, x2,
                               reduction=self.reduction,
                               loss_weight=self.loss_weight,
                               reduction_override=reduction_override)


if __name__ == "__main__":
    key = jax.random.PRNGKey(0)
    k1, k2, k3, k4, k5, k6, k7, k8, k9, k10 = jax.random.split(key, 10)

    # NCHW inputs, as a segmentation/detection loss would receive.
    x1 = jax.random.normal(k1, (2, 4, 16, 16), dtype=jnp.float32)
    x2 = jax.random.normal(k2, (2, 4, 16, 16), dtype=jnp.float32)

    loss_mod = MSELossPallas(reduction="mean", loss_weight=1.0)

    out_mean = jax.block_until_ready(loss_mod(x1, x2))
    out_sum = jax.block_until_ready(loss_mod(x1, x2, reduction_override="sum"))
    out_none = jax.block_until_ready(loss_mod(x1, x2, reduction_override="none"))

    ref_none = (x1 - x2) ** 2
    assert out_none.shape == x1.shape
    assert jnp.allclose(out_none, ref_none, atol=1e-5, rtol=1e-5)
    assert jnp.allclose(out_mean, jnp.mean(ref_none), atol=1e-5, rtol=1e-5)
    assert jnp.allclose(out_sum, jnp.sum(ref_none), atol=1e-3, rtol=1e-5)

    # Awkward (n % 128 != 0) shape -> exercises the zero-pad fallback path.
    y1 = jax.random.normal(k3, (3, 5, 7, 11), dtype=jnp.float32)
    y2 = jax.random.normal(k4, (3, 5, 7, 11), dtype=jnp.float32)
    y_sum = jax.block_until_ready(
        mse_loss_pallas(y1, y2, reduction="sum", loss_weight=0.5))
    y_none = jax.block_until_ready(
        mse_loss_pallas(y1, y2, reduction="none", loss_weight=0.5))
    assert y_none.shape == y1.shape
    assert jnp.allclose(y_none, 0.5 * (y1 - y2) ** 2, atol=1e-5, rtol=1e-5)
    assert jnp.allclose(y_sum, 0.5 * jnp.sum((y1 - y2) ** 2), atol=1e-3, rtol=1e-5)

    # Multi-block + 2-segment accumulator grid (small forced block size).
    z1 = jax.random.normal(k5, (4, 4, 16, 16), dtype=jnp.float32)
    z2 = jax.random.normal(k6, (4, 4, 16, 16), dtype=jnp.float32)
    z_mean = jax.block_until_ready(
        mse_loss_pallas(z1, z2, reduction="mean", loss_weight=2.0,
                        _target_block_elems=1024))
    assert jnp.allclose(z_mean, 2.0 * jnp.mean((z1 - z2) ** 2),
                        atol=1e-5, rtol=1e-5)

    # No-pad path with ragged rows (rows=18, blocks of 8): exercises the
    # masked edge block, the odd-block clamp and segments, for sum and none.
    w1 = jax.random.normal(k7, (18, 128), dtype=jnp.float32)
    w2 = jax.random.normal(k8, (18, 128), dtype=jnp.float32)
    w_sum = jax.block_until_ready(
        mse_loss_pallas(w1, w2, reduction="sum", loss_weight=0.5,
                        _target_block_elems=1024))
    w_none = jax.block_until_ready(
        mse_loss_pallas(w1, w2, reduction="none", loss_weight=0.5,
                        _target_block_elems=1024))
    assert w_none.shape == w1.shape
    assert jnp.allclose(w_none, 0.5 * (w1 - w2) ** 2, atol=1e-5, rtol=1e-5)
    assert jnp.allclose(w_sum, 0.5 * jnp.sum((w1 - w2) ** 2), atol=1e-3, rtol=1e-5)

    # Wide (1024-lane) slab path, multi-block + segments.
    v1 = jax.random.normal(k9, (128, 32, 32), dtype=jnp.float32)
    v2 = jax.random.normal(k10, (128, 32, 32), dtype=jnp.float32)
    v_mean = jax.block_until_ready(
        mse_loss_pallas(v1, v2, reduction="mean", loss_weight=1.5,
                        _target_block_elems=32 * 1024))
    assert jnp.allclose(v_mean, 1.5 * jnp.mean((v1 - v2) ** 2),
                        atol=1e-5, rtol=1e-4)

    print("KERNEL_OK")
</pallas_src>

<mosaic_0001>
module attributes {stable_mosaic.version = 11 : i64} {
  func.func @_mse_reduce_kernel(%arg0: i32, %arg1: i32, %arg2: memref<16x128xf32, #tpu.memory_space<vmem>>, %arg3: memref<16x128xf32, #tpu.memory_space<vmem>>, %arg4: memref<1x8x128xf32, #tpu.memory_space<vmem>>, %arg5: memref<8x128xf32, #tpu.memory_space<vmem>>) attributes {dimension_semantics = [#tpu.dimension_semantics<parallel>, #tpu.dimension_semantics<arbitrary>], iteration_bounds = array<i64: 1, 1>, scalar_prefetch = 0 : i64, scratch_operands = 1 : i64, tpu.core_type = #tpu.core_type<tc>, window_params = [{transform_indices = @transform_0, window_bounds = array<i64: 16, 128>}, {transform_indices = @transform_1, window_bounds = array<i64: 16, 128>}, {transform_indices = @transform_2, window_bounds = array<i64: 1, 8, 128>}]} {
    %c1_i32 = arith.constant 1 : i32
    %0 = arith.muli %arg0, %c1_i32 : i32
    %1 = arith.addi %0, %arg1 : i32
    %c16_i32 = arith.constant 16 : i32
    %2 = arith.muli %1, %c16_i32 : i32
    %c0_i32 = arith.constant 0 : i32
    %3 = arith.cmpi eq, %arg1, %c0_i32 : i32
    %4 = arith.extui %3 : i1 to i32
    %c0_i32_0 = arith.constant 0 : i32
    %5 = arith.cmpi ne, %4, %c0_i32_0 : i32
    scf.if %5 {
      %cst = arith.constant 0.000000e+00 : f32
      %20 = vector.broadcast %cst : f32 to vector<8x128xf32>
      %c0_10 = arith.constant 0 : index
      %c0_11 = arith.constant 0 : index
      %21 = vector.load %arg5[%c0_10, %c0_11] : memref<8x128xf32, #tpu.memory_space<vmem>>, vector<8x128xf32>
      tpu.vector_store %arg5[%c0_10, %c0_11], %20 {strides = array<i32>} : memref<8x128xf32, #tpu.memory_space<vmem>>, vector<8x128xf32>,
    } else {
    }
    %c0 = arith.constant 0 : index
    %c0_1 = arith.constant 0 : index
    %6 = vector.load %arg2[%c0, %c0_1] : memref<16x128xf32, #tpu.memory_space<vmem>>, vector<16x128xf32>
    %c0_2 = arith.constant 0 : index
    %c0_3 = arith.constant 0 : index
    %7 = vector.load %arg3[%c0_2, %c0_3] : memref<16x128xf32, #tpu.memory_space<vmem>>, vector<16x128xf32>
    %8 = arith.subf %6, %7 : vector<16x128xf32>
    %9 = arith.mulf %8, %8 : vector<16x128xf32>
    %c16_i32_4 = arith.constant 16 : i32
    %10 = arith.addi %2, %c16_i32_4 : i32
    %c16_i32_5 = arith.constant 16 : i32
    %11 = arith.cmpi sle, %10, %c16_i32_5 : i32
    %12 = arith.extui %11 : i1 to i32
    %c0_i32_6 = arith.constant 0 : i32
    %13 = arith.cmpi ne, %12, %c0_i32_6 : i32
    scf.if %13 {
      %c0_10 = arith.constant 0 : index
      %c0_11 = arith.constant 0 : index
      %20 = vector.load %arg5[%c0_10, %c0_11] : memref<8x128xf32, #tpu.memory_space<vmem>>, vector<8x128xf32>
      %21 = vector.shape_cast %9 : vector<16x128xf32> to vector<2x8x128xf32>
      %cst = arith.constant dense<0.000000e+00> : vector<8x128xf32>
      %22 = vector.multi_reduction <add>, %21, %cst [0] : vector<2x8x128xf32> to vector<8x128xf32>
      %23 = arith.addf %20, %22 : vector<8x128xf32>
      %c0_12 = arith.constant 0 : index
      %c0_13 = arith.constant 0 : index
      %24 = vector.load %arg5[%c0_12, %c0_13] : memref<8x128xf32, #tpu.memory_space<vmem>>, vector<8x128xf32>
      tpu.vector_store %arg5[%c0_12, %c0_13], %23 {strides = array<i32>} : memref<8x128xf32, #tpu.memory_space<vmem>>, vector<8x128xf32>,
    } else {
    }
    %true = arith.constant true
    %14 = arith.xori %11, %true : i1
    %15 = arith.extui %14 : i1 to i32
    %c0_i32_7 = arith.constant 0 : i32
    %16 = arith.cmpi ne, %15, %c0_i32_7 : i32
    scf.if %16 {
      %20 = tpu.iota {dimensions = array<i32: 0>} : vector<16x128xi32>
      %21 = vector.broadcast %2 : i32 to vector<16x128xi32>
      %22 = arith.addi %21, %20 : vector<16x128xi32>
      %c0_10 = arith.constant 0 : index
      %c0_11 = arith.constant 0 : index
      %23 = vector.load %arg5[%c0_10, %c0_11] : memref<8x128xf32, #tpu.memory_space<vmem>>, vector<8x128xf32>
      %c16_i32_12 = arith.constant 16 : i32
      %24 = vector.broadcast %c16_i32_12 : i32 to vector<16x128xi32>
      %25 = arith.cmpi slt, %22, %24 : vector<16x128xi32>
      %cst = arith.constant 0.000000e+00 : f32
      %26 = vector.broadcast %cst : f32 to vector<16x128xf32>
      %27 = arith.select %25, %9, %26 : vector<16x128xi1>, vector<16x128xf32>
      %28 = vector.shape_cast %27 : vector<16x128xf32> to vector<2x8x128xf32>
      %cst_13 = arith.constant dense<0.000000e+00> : vector<8x128xf32>
      %29 = vector.multi_reduction <add>, %28, %cst_13 [0] : vector<2x8x128xf32> to vector<8x128xf32>
      %30 = arith.addf %23, %29 : vector<8x128xf32>
      %c0_14 = arith.constant 0 : index
      %c0_15 = arith.constant 0 : index
      %31 = vector.load %arg5[%c0_14, %c0_15] : memref<8x128xf32, #tpu.memory_space<vmem>>, vector<8x128xf32>
      tpu.vector_store %arg5[%c0_14, %c0_15], %30 {strides = array<i32>} : memref<8x128xf32, #tpu.memory_space<vmem>>, vector<8x128xf32>,
    } else {
    }
    %c0_i32_8 = arith.constant 0 : i32
    %17 = arith.cmpi eq, %arg1, %c0_i32_8 : i32
    %18 = arith.extui %17 : i1 to i32
    %c0_i32_9 = arith.constant 0 : i32
    %19 = arith.cmpi ne, %18, %c0_i32_9 : i32
    scf.if %19 {
      %c0_10 = arith.constant 0 : index
      %c0_11 = arith.constant 0 : index
      %20 = vector.load %arg5[%c0_10, %c0_11] : memref<8x128xf32, #tpu.memory_space<vmem>>, vector<8x128xf32>
      %c0_12 = arith.constant 0 : index
      %c0_13 = arith.constant 0 : index
      %c0_14 = arith.constant 0 : index
      %21 = vector.load %arg4[%c0_12, %c0_13, %c0_14] : memref<1x8x128xf32, #tpu.memory_space<vmem>>, vector<1x8x128xf32>
      %22 = vector.shape_cast %21 : vector<1x8x128xf32> to vector<8x128xf32>
      %23 = vector.shape_cast %20 : vector<8x128xf32> to vector<1x8x128xf32>
      tpu.vector_store %arg4[%c0_12, %c0_13, %c0_14], %23 {strides = array<i32>} : memref<1x8x128xf32, #tpu.memory_space<vmem>>, vector<1x8x128xf32>,
    } else {
    }
    return
  }
  func.func @transform_0(%arg0: i32, %arg1: i32) -> (i32, i32) {
    %c1_i32 = arith.constant 1 : i32
    %0 = arith.muli %arg0, %c1_i32 : i32
    %1 = arith.addi %0, %arg1 : i32
    %c0_i32 = arith.constant 0 : i32
    %2 = arith.minsi %1, %c0_i32 : i32
    %c0_i32_0 = arith.constant 0 : i32
    %c0_i32_1 = arith.constant 0 : i32
    return %2, %c0_i32_0 : i32, i32
  }
  func.func @transform_1(%arg0: i32, %arg1: i32) -> (i32, i32) {
    %c1_i32 = arith.constant 1 : i32
    %0 = arith.muli %arg0, %c1_i32 : i32
    %1 = arith.addi %0, %arg1 : i32
    %c0_i32 = arith.constant 0 : i32
    %2 = arith.minsi %1, %c0_i32 : i32
    %c0_i32_0 = arith.constant 0 : i32
    %c0_i32_1 = arith.constant 0 : i32
    return %2, %c0_i32_0 : i32, i32
  }
  func.func @transform_2(%arg0: i32, %arg1: i32) -> (i32, i32, i32) {
    %c0_i32 = arith.constant 0 : i32
    %c0_i32_0 = arith.constant 0 : i32
    %c0_i32_1 = arith.constant 0 : i32
    return %arg0, %c0_i32, %c0_i32_0 : i32, i32, i32
  }
}

</mosaic_0001>

<bundles_post_ra>
// kernel: tpu_custom_call.1
= control target key start
LH: loop header
LB: loop body
LE: loop exit
PB: predicated region body
PF: predicated region fallthrough
CT: control target
= control target key end

     0   :  { %7 = vsyncpa [#allocation4], 0  ;;  %s260_s0 = inlined_call_operand.hbm [shape: f32[16,128], index: 0, kind: input, shape index: {}]   ;;  %s261_s1 = inlined_call_operand.hbm [shape: f32[16,128], index: 1, kind: input, shape index: {}]   ;;  %s262_s2 = inlined_call_operand.hbm [shape: f32[1,8,128], index: 2, kind: output, shape index: {}]  }
   0x1   :  { %8 = vsyncpa [#allocation7], 0 }
   0x2   :  { %9 = vsyncpa [#allocation5], 0  ;;  %s204_s9 = smov [#allocation3]   ;;  %s132_s13 = scalar_lea.hbm %s260_s0, 256 }
   0x3   :  { %s21_s10 = sshll.u32 %s204_s9, 4  ;;  %p133_p0 = scmp.ne.s32.totalorder %s260_s0, %s132_s13  ;;  %s22_s10 = int_to_ptr.vmem [resolvable:$true] %s21_s10 }
   0x4   :  { %p136_p1 = scmp.lt.u32.totalorder %s132_s13, %s260_s0 }
   0x6   :  { %p138_p2 = pnand %p136_p1, %p133_p0 }
   0x8   :  { %141 = shalt.err (!%p138_p2)
}
   0x9   :  { %s142_s18 = scalar_lea.vmem %s22_s10, 256  ;;  %p147_p4 = scmp.lt.s32.totalorder %s22_s10, %s22_s10 }
   0xa   :  { %p143_p3 = scmp.ne.s32.totalorder %s22_s10, %s142_s18  ;;  %p148_p5 = scmp.lt.s32.totalorder %s142_s18, %s142_s18 }
   0xc   :  { %p149_p6 = por %p148_p5, %p147_p4 }
   0xe   :  { %p150_p7 = pnand %p149_p6, %p143_p3 }
  0x10   :  { %153 = shalt.err (!%p150_p7)
}
  0x11   :  { %s205_s19 = smov 128   ;;  %s206_s20 = smov 8  }
  0x12   :  { %27 = dma.hbm_to_vmem [thread:$0]  %s260_s0, 256, %s22_s10, [#allocation4], %s205_s19, %s205_s19, %s206_s20  }
  0x13   :  { %s207_s23 = smov [#allocation6]   ;;  %s154_s27 = scalar_lea.hbm %s261_s1, 256 }
  0x14   :  { %s39_s24 = sshll.u32 %s207_s23, 4  ;;  %p155_p8 = scmp.ne.s32.totalorder %s261_s1, %s154_s27  ;;  %s40_s24 = int_to_ptr.vmem [resolvable:$true] %s39_s24 }
  0x15   :  { %p158_p9 = scmp.lt.u32.totalorder %s154_s27, %s261_s1 }
  0x17   :  { %p160_p10 = pnand %p158_p9, %p155_p8 }
  0x19   :  { %163 = shalt.err (!%p160_p10)
}
  0x1a   :  { %s164_s4 = scalar_lea.vmem %s40_s24, 256  ;;  %p169_p12 = scmp.lt.s32.totalorder %s40_s24, %s40_s24 }
  0x1b   :  { %p165_p11 = scmp.ne.s32.totalorder %s40_s24, %s164_s4  ;;  %p170_p13 = scmp.lt.s32.totalorder %s164_s4, %s164_s4 }
  0x1d   :  { %p171_p0 = por %p170_p13, %p169_p12 }
  0x1f   :  { %p172_p1 = pnand %p171_p0, %p165_p11 }
  0x21   :  { %175 = shalt.err (!%p172_p1)
}
  0x22   :  { %45 = dma.hbm_to_vmem [thread:$0]  %s261_s1, 256, %s40_s24, [#allocation7], %s205_s19, %s205_s19, %s206_s20  }
  0x23   :  { %198 = dma.done.wait [#allocation4], 256  }
  0x24   :  { %199 = vsyncadd [#allocation4], 4294967040 }
  0x25   :  { %200 = dma.done.wait [#allocation7], 256  }
  0x26   :  { %201 = vsyncadd [#allocation7], 4294967040  ;;  %v67_v0 = vld [vmem:[#allocation3] sm:$0xff]  ;;  %v68_v1 = vld [vmem:[#allocation3 + $0x8] sm:$0xff]  ;;  %s208_s6 = smov [#allocation8]  }
  0x27   :  { %v69_v2 = vld [vmem:[#allocation6] sm:$0xff]  ;;  %v70_v3 = vld [vmem:[#allocation6 + $0x8] sm:$0xff]  ;;  %s113_s7 = sshll.u32 %s208_s6, 4  ;;  %s114_s7 = int_to_ptr.vmem [resolvable:$true] %s113_s7 }
  0x28   :  { %v71_v4 = vsub.f32 %v67_v0, %v69_v2  ;;  %v72_v5 = vsub.f32 %v68_v1, %v70_v3  ;;  %s176_s8 = scalar_lea.vmem %s114_s7, 128  ;;  %p181_p3 = scmp.lt.s32.totalorder %s114_s7, %s114_s7 }
  0x29   :  { %p177_p2 = scmp.ne.s32.totalorder %s114_s7, %s176_s8  ;;  %p182_p4 = scmp.lt.s32.totalorder %s176_s8, %s176_s8 }
  0x2a   :  { %v73_v6 = vmul.f32 %v71_v4, %v71_v4  ;;  %v74_v7 = vmul.f32 %v72_v5, %v72_v5 }
  0x2b   :  { %p183_p5 = por %p182_p4, %p181_p3 }
  0x2c   :  { %v81_v8 = vadd.f32 %v74_v7, %v73_v6 }
  0x2d   :  { %p184_p6 = pnand %p183_p5, %p177_p2 }
  0x2e   :  { %106 = vst [vmem:[#allocation8] sm:$0xff] %v81_v8 }
  0x2f   :  { %187 = shalt.err (!%p184_p6)
}
  0x30   :  { %s188_s10 = scalar_lea.hbm %s262_s2, 128 }
  0x31   :  { %p189_p7 = scmp.ne.s32.totalorder %s262_s2, %s188_s10  ;;  %p192_p8 = scmp.lt.u32.totalorder %s188_s10, %s262_s2 }
  0x33   :  { %p194_p9 = pnand %p192_p8, %p189_p7 }
  0x35   :  { %197 = shalt.err (!%p194_p9)
}
  0x36   :  { %116 = dma.vmem_to_hbm [thread:$0]  %s114_s7, 128, %s262_s2, [#allocation5]  }
  0x37   :  { %202 = dma.done.wait [#allocation5], 128  }
  0x38   :  { %203 = vsyncadd [#allocation5], 4294967168 }
  0x39   :  { %120 = vsyncpa [#allocation4], 1 }
  0x3a   :  { %121 = vsyncpa [#allocation7], 1 }
  0x3b   :  { %122 = vsyncpa [#allocation5], 1 }

</bundles_post_ra>
